<compile_context>
chip_gen: v6e
topology: v6e:2x2x1
jax: 0.10.0
libtpu: 0.0.40
codegen_flags: <defaults>
</compile_context>

<pallas_src>
import functools

import jax
import jax.numpy as jnp
from jax.experimental import pallas as pl
from jax.experimental.pallas import tpu as pltpu

NEG_SLOPE = 0.01   # nn.LeakyReLU default
BN_EPS = 1e-5      # nn.BatchNorm1d default
LANE = 128
TK = 512           # hidden-dim tile (sweepable; 4096 % TK == 0)


def _round_up(n, m):
    return ((n + m - 1) // m) * m


def _leaky_relu(x):
    return jnp.where(x >= 0, x, NEG_SLOPE * x)


def _semantic_eeg_kernel(x_ref, w1_ref, b1_ref, w2_ref, b2_ref, w3_ref, b3_ref,
                         sem_ref, label_ref, acc_ref):
    k = pl.program_id(0)

    @pl.when(k == 0)
    def _():
        acc_ref[...] = jnp.zeros_like(acc_ref)

    # fc01 slab: Dropout(identity, eval) -> Linear(D, TK slice) -> LeakyReLU
    h1 = jnp.dot(x_ref[...], w1_ref[...], preferred_element_type=jnp.float32)
    h1 = _leaky_relu(h1 + b1_ref[...])                       # (B, TK) fp32

    # fc02 partial accumulation over the hidden dim (fp32 accumulator).
    acc_ref[...] += jnp.dot(h1.astype(w2_ref.dtype), w2_ref[...],
                            preferred_element_type=jnp.float32)

    @pl.when(k == pl.num_programs(0) - 1)
    def _():
        # Finish fc02: bias + LeakyReLU -> semantic features.
        sem = _leaky_relu(acc_ref[...] + b2_ref[...])         # (B, feat_p) fp32
        sem_ref[...] = sem

        # fc03: Linear + nn.Softmax() legacy dim=0 (softmax over the BATCH dim).
        logits = jnp.dot(sem, w3_ref[...],
                         preferred_element_type=jnp.float32) + b3_ref[...]
        m = jnp.max(logits, axis=0, keepdims=True)
        e = jnp.exp(logits - m)
        label_ref[...] = e / jnp.sum(e, axis=0, keepdims=True)


def prepare_params(params, eeg_channel):
    """ONE-TIME parameter transform (call outside jit / per checkpoint, not per step):
    fold BatchNorm1d (eval) into fc01, zero-pad feature/class dims to lane
    multiples, cast the big weights to bfloat16."""
    F = params["bn_weight"].shape[0]
    C = eeg_channel
    hidden = params["w1"].shape[1]
    feat = params["w2"].shape[1]
    ncls = params["w3"].shape[1]
    feat_p = _round_up(feat, LANE)
    ncls_p = _round_up(ncls, LANE)

    # BN (eval) -> per-flattened-column scale/shift (row-major flatten f*C + c).
    scale_f = params["bn_weight"] / jnp.sqrt(params["bn_running_var"] + BN_EPS)  # (F,)
    shift_f = params["bn_bias"] - params["bn_running_mean"] * scale_f            # (F,)
    scale = jnp.repeat(scale_f, C)                                               # (D,)
    shift = jnp.repeat(shift_f, C)                                               # (D,)

    w1 = params["w1"].astype(jnp.float32)                    # (D, hidden)
    b1 = params["b1"].astype(jnp.float32).reshape(1, hidden)
    w1_fold = scale[:, None] * w1
    b1_fold = b1 + shift[None, :] @ w1

    w2 = params["w2"].astype(jnp.float32)                    # (hidden, feat)
    b2 = params["b2"].astype(jnp.float32).reshape(1, feat)
    w3 = params["w3"].astype(jnp.float32)                    # (feat, ncls)
    b3 = params["b3"].astype(jnp.float32).reshape(1, ncls)

    return {
        "w1": w1_fold.astype(jnp.bfloat16),
        "b1": b1_fold,                                        # fp32
        "w2": jnp.pad(w2, ((0, 0), (0, feat_p - feat))).astype(jnp.bfloat16),
        "b2": jnp.pad(b2, ((0, 0), (0, feat_p - feat))),      # fp32
        "w3": jnp.pad(w3, ((0, feat_p - feat), (0, ncls_p - ncls))),  # fp32 (tiny)
        "b3": jnp.pad(b3, ((0, 0), (0, ncls_p - ncls))),      # fp32
    }


def semantic_eeg_extractor(eeg, p, *, feature_size, num_class):
    """eeg: (B, F, C) float32. p: prepared params (see prepare_params).
    Returns (semantic_features (B,1,feature_size), label (B,1,num_class))."""
    B, F, C = eeg.shape
    D = F * C
    x = eeg.reshape(B, D).astype(jnp.bfloat16)

    w1, b1 = p["w1"], p["b1"]       # (D, hidden) bf16, (1, hidden) f32
    w2, b2 = p["w2"], p["b2"]       # (hidden, feat_p) bf16, (1, feat_p) f32
    w3, b3 = p["w3"], p["b3"]       # (feat_p, ncls_p) f32, (1, ncls_p) f32
    hidden = w1.shape[1]
    feat_p = w2.shape[1]
    ncls_p = w3.shape[1]
    assert hidden % TK == 0
    n_k = hidden // TK

    flops = 2 * B * (D * hidden + hidden * feat_p + feat_p * ncls_p)
    bytes_accessed = (w1.size * 2 + w2.size * 2 + x.size * 2
                      + (b1.size + b2.size + w3.size + b3.size) * 4
                      + B * (feat_p + ncls_p) * 4)

    sem_p, label_p = pl.pallas_call(
        _semantic_eeg_kernel,
        out_shape=(
            jax.ShapeDtypeStruct((B, feat_p), jnp.float32),
            jax.ShapeDtypeStruct((B, ncls_p), jnp.float32),
        ),
        grid=(n_k,),
        in_specs=[
            pl.BlockSpec((B, D), lambda k: (0, 0)),            # x (stays resident)
            pl.BlockSpec((D, TK), lambda k: (0, k)),           # w1 slab
            pl.BlockSpec((1, TK), lambda k: (0, k)),           # b1 slab
            pl.BlockSpec((TK, feat_p), lambda k: (k, 0)),      # w2 slab
            pl.BlockSpec((1, feat_p), lambda k: (0, 0)),       # b2 (resident)
            pl.BlockSpec((feat_p, ncls_p), lambda k: (0, 0)),  # w3 (resident)
            pl.BlockSpec((1, ncls_p), lambda k: (0, 0)),       # b3 (resident)
        ],
        out_specs=(
            pl.BlockSpec((B, feat_p), lambda k: (0, 0)),       # sem (accumulator-resident)
            pl.BlockSpec((B, ncls_p), lambda k: (0, 0)),       # label
        ),
        scratch_shapes=[pltpu.VMEM((B, feat_p), jnp.float32)], # fc02 fp32 accumulator
        compiler_params=pltpu.CompilerParams(
            dimension_semantics=("arbitrary",),                # reduction axis
            vmem_limit_bytes=16 << 20,
        ),
        cost_estimate=pl.CostEstimate(
            flops=flops, transcendentals=B * ncls_p, bytes_accessed=bytes_accessed),
    )(x, w1, b1, w2, b2, w3, b3)

    # Slice padding away; unsqueeze(1) as in the PyTorch forward.
    sem = sem_p[:, :feature_size]
    label = label_p[:, :num_class]
    return sem[:, None, :], label[:, None, :]


def init_params(key, F, C, hidden=4096, feature_size=200, num_class=10):
    D = F * C
    ks = jax.random.split(key, 8)
    return {
        # BatchNorm1d parameters / running stats (deterministic, non-trivial).
        "bn_weight": 1.0 + 0.1 * jax.random.normal(ks[0], (F,), jnp.float32),
        "bn_bias": 0.1 * jax.random.normal(ks[1], (F,), jnp.float32),
        "bn_running_mean": 0.05 * jax.random.normal(ks[2], (F,), jnp.float32),
        "bn_running_var": 1.0 + 0.1 * jax.random.uniform(ks[3], (F,), jnp.float32),
        # Linear weights stored pre-transposed (in, out) so the kernel does x @ W.
        "w1": 0.02 * jax.random.normal(ks[4], (D, hidden), jnp.float32),
        "b1": jnp.zeros((1, hidden), jnp.float32),
        "w2": 0.02 * jax.random.normal(ks[5], (hidden, feature_size), jnp.float32),
        "b2": 0.01 * jnp.ones((1, feature_size), jnp.float32),
        "w3": 0.02 * jax.random.normal(ks[6], (feature_size, num_class), jnp.float32),
        "b3": jnp.zeros((1, num_class), jnp.float32),
    }


def _reference_fp32(eeg, params):
    """Pure-JAX fp32 reference of the PyTorch forward (eval mode)."""
    B, F, C = eeg.shape
    scale = params["bn_weight"] / jnp.sqrt(params["bn_running_var"] + BN_EPS)
    x = (eeg - params["bn_running_mean"][None, :, None]) * scale[None, :, None] \
        + params["bn_bias"][None, :, None]
    x = x.reshape(B, -1)
    h1 = _leaky_relu(x @ params["w1"] + params["b1"])
    sem = _leaky_relu(h1 @ params["w2"] + params["b2"])
    logits = sem @ params["w3"] + params["b3"]
    # nn.Softmax() legacy dim deduction for the 3-D (B,1,ncls) input -> dim 0.
    m = jnp.max(logits, axis=0, keepdims=True)
    e = jnp.exp(logits - m)
    label = e / jnp.sum(e, axis=0, keepdims=True)
    return sem[:, None, :], label[:, None, :]


if __name__ == "__main__":
    # Small shapes consistent with the module: B=2, eeg_features=8, eeg_channel=16.
    B, F, C = 2, 8, 16
    feature_size, num_class = 200, 10

    key = jax.random.PRNGKey(0)
    k_x, k_p = jax.random.split(key)
    eeg = jax.random.normal(k_x, (B, F, C), jnp.float32)
    params = init_params(k_p, F, C, hidden=4096,
                         feature_size=feature_size, num_class=num_class)

    # One-time param prep (BN fold + pad + bf16 cast), outside the jitted step.
    prepared = prepare_params(params, eeg_channel=C)

    fwd = jax.jit(functools.partial(semantic_eeg_extractor,
                                    feature_size=feature_size,
                                    num_class=num_class))
    sem, label = fwd(eeg, prepared)
    jax.block_until_ready((sem, label))

    assert sem.shape == (B, 1, feature_size)
    assert label.shape == (B, 1, num_class)
    # Softmax was taken over the batch dim (torch legacy nn.Softmax() behavior).
    assert jnp.allclose(jnp.sum(label, axis=0), 1.0, atol=1e-5)

    # Numerical check vs fp32 reference (bf16 weights -> small expected drift).
    sem_ref, label_ref = _reference_fp32(eeg, params)
    assert jnp.max(jnp.abs(sem - sem_ref)) < 5e-2
    assert jnp.max(jnp.abs(label - label_ref)) < 2e-2

    print("KERNEL_OK")
</pallas_src>

<mosaic_0001>
module attributes {stable_mosaic.version = 11 : i64} {
  func.func @_semantic_eeg_kernel(%arg0: i32, %arg1: memref<2x128xbf16, #tpu.memory_space<vmem>>, %arg2: memref<128x512xbf16, #tpu.memory_space<vmem>>, %arg3: memref<1x512xf32, #tpu.memory_space<vmem>>, %arg4: memref<512x256xbf16, #tpu.memory_space<vmem>>, %arg5: memref<1x256xf32, #tpu.memory_space<vmem>>, %arg6: memref<256x128xf32, #tpu.memory_space<vmem>>, %arg7: memref<1x128xf32, #tpu.memory_space<vmem>>, %arg8: memref<2x256xf32, #tpu.memory_space<vmem>>, %arg9: memref<2x128xf32, #tpu.memory_space<vmem>>, %arg10: memref<2x256xf32, #tpu.memory_space<vmem>>) attributes {dimension_semantics = [#tpu.dimension_semantics<arbitrary>], iteration_bounds = array<i64: 8>, scalar_prefetch = 0 : i64, scratch_operands = 1 : i64, tpu.core_type = #tpu.core_type<tc>, window_params = [{pipeline_mode = #tpu.pipeline_mode<synchronous>, transform_indices = @transform_0, window_bounds = array<i64: 2, 128>}, {transform_indices = @transform_1, window_bounds = array<i64: 128, 512>}, {transform_indices = @transform_2, window_bounds = array<i64: 1, 512>}, {transform_indices = @transform_3, window_bounds = array<i64: 512, 256>}, {pipeline_mode = #tpu.pipeline_mode<synchronous>, transform_indices = @transform_4, window_bounds = array<i64: 1, 256>}, {pipeline_mode = #tpu.pipeline_mode<synchronous>, transform_indices = @transform_5, window_bounds = array<i64: 256, 128>}, {pipeline_mode = #tpu.pipeline_mode<synchronous>, transform_indices = @transform_6, window_bounds = array<i64: 1, 128>}, {pipeline_mode = #tpu.pipeline_mode<synchronous>, transform_indices = @transform_7, window_bounds = array<i64: 2, 256>}, {pipeline_mode = #tpu.pipeline_mode<synchronous>, transform_indices = @transform_8, window_bounds = array<i64: 2, 128>}]} {
    %c0_i32 = arith.constant 0 : i32
    %0 = arith.cmpi eq, %arg0, %c0_i32 : i32
    %1 = arith.extui %0 : i1 to i32
    %c0_i32_0 = arith.constant 0 : i32
    %2 = arith.cmpi ne, %1, %c0_i32_0 : i32
    scf.if %2 {
      %cst_16 = arith.constant 0.000000e+00 : f32
      %23 = vector.broadcast %cst_16 : f32 to vector<2x256xf32>
      %c0_17 = arith.constant 0 : index
      %c0_18 = arith.constant 0 : index
      %24 = vector.load %arg10[%c0_17, %c0_18] : memref<2x256xf32, #tpu.memory_space<vmem>>, vector<2x256xf32>
      tpu.vector_store %arg10[%c0_17, %c0_18], %23 {strides = array<i32>} : memref<2x256xf32, #tpu.memory_space<vmem>>, vector<2x256xf32>,
    } else {
    }
    %c0 = arith.constant 0 : index
    %c0_1 = arith.constant 0 : index
    %3 = vector.load %arg1[%c0, %c0_1] : memref<2x128xbf16, #tpu.memory_space<vmem>>, vector<2x128xbf16>
    %c0_2 = arith.constant 0 : index
    %c0_3 = arith.constant 0 : index
    %4 = vector.load %arg2[%c0_2, %c0_3] : memref<128x512xbf16, #tpu.memory_space<vmem>>, vector<128x512xbf16>
    %cst = arith.constant dense<0.000000e+00> : vector<2x512xf32>
    %5 = tpu.matmul %3, %4, %cst {dimension_numbers = #tpu.dot_dimension_numbers<[1], [0], [0], [1], [0, 0, 1, 1], [], []>} : vector<2x128xbf16>, vector<128x512xbf16>, vector<2x512xf32> -> vector<2x512xf32>
    %c0_4 = arith.constant 0 : index
    %c0_5 = arith.constant 0 : index
    %6 = vector.load %arg3[%c0_4, %c0_5] : memref<1x512xf32, #tpu.memory_space<vmem>>, vector<1x512xf32>
    %7 = vector.broadcast %6 : vector<1x512xf32> to vector<2x512xf32>
    %8 = arith.addf %5, %7 : vector<2x512xf32>
    %cst_6 = arith.constant 0.000000e+00 : f32
    %9 = vector.broadcast %cst_6 : f32 to vector<2x512xf32>
    %10 = arith.cmpf oge, %8, %9 : vector<2x512xf32>
    %cst_7 = arith.constant 0.00999999977 : f32
    %11 = vector.broadcast %cst_7 : f32 to vector<2x512xf32>
    %12 = arith.mulf %11, %8 : vector<2x512xf32>
    %13 = arith.select %10, %8, %12 : vector<2x512xi1>, vector<2x512xf32>
    %c0_8 = arith.constant 0 : index
    %c0_9 = arith.constant 0 : index
    %14 = vector.load %arg10[%c0_8, %c0_9] : memref<2x256xf32, #tpu.memory_space<vmem>>, vector<2x256xf32>
    %15 = arith.truncf %13 : vector<2x512xf32> to vector<2x512xbf16>
    %c0_10 = arith.constant 0 : index
    %c0_11 = arith.constant 0 : index
    %16 = vector.load %arg4[%c0_10, %c0_11] : memref<512x256xbf16, #tpu.memory_space<vmem>>, vector<512x256xbf16>
    %cst_12 = arith.constant dense<0.000000e+00> : vector<2x256xf32>
    %17 = tpu.matmul %15, %16, %cst_12 {dimension_numbers = #tpu.dot_dimension_numbers<[1], [0], [0], [1], [0, 0, 1, 1], [], []>} : vector<2x512xbf16>, vector<512x256xbf16>, vector<2x256xf32> -> vector<2x256xf32>
    %18 = arith.addf %14, %17 : vector<2x256xf32>
    %c0_13 = arith.constant 0 : index
    %c0_14 = arith.constant 0 : index
    %19 = vector.load %arg10[%c0_13, %c0_14] : memref<2x256xf32, #tpu.memory_space<vmem>>, vector<2x256xf32>
    tpu.vector_store %arg10[%c0_13, %c0_14], %18 {strides = array<i32>} : memref<2x256xf32, #tpu.memory_space<vmem>>, vector<2x256xf32>,
    %c7_i32 = arith.constant 7 : i32
    %20 = arith.cmpi eq, %arg0, %c7_i32 : i32
    %21 = arith.extui %20 : i1 to i32
    %c0_i32_15 = arith.constant 0 : i32
    %22 = arith.cmpi ne, %21, %c0_i32_15 : i32
    scf.if %22 {
      %c0_16 = arith.constant 0 : index
      %c0_17 = arith.constant 0 : index
      %23 = vector.load %arg10[%c0_16, %c0_17] : memref<2x256xf32, #tpu.memory_space<vmem>>, vector<2x256xf32>
      %c0_18 = arith.constant 0 : index
      %c0_19 = arith.constant 0 : index
      %24 = vector.load %arg5[%c0_18, %c0_19] : memref<1x256xf32, #tpu.memory_space<vmem>>, vector<1x256xf32>
      %25 = vector.broadcast %24 : vector<1x256xf32> to vector<2x256xf32>
      %26 = arith.addf %23, %25 : vector<2x256xf32>
      %cst_20 = arith.constant 0.000000e+00 : f32
      %27 = vector.broadcast %cst_20 : f32 to vector<2x256xf32>
      %28 = arith.cmpf oge, %26, %27 : vector<2x256xf32>
      %cst_21 = arith.constant 0.00999999977 : f32
      %29 = vector.broadcast %cst_21 : f32 to vector<2x256xf32>
      %30 = arith.mulf %29, %26 : vector<2x256xf32>
      %31 = arith.select %28, %26, %30 : vector<2x256xi1>, vector<2x256xf32>
      %c0_22 = arith.constant 0 : index
      %c0_23 = arith.constant 0 : index
      %32 = vector.load %arg8[%c0_22, %c0_23] : memref<2x256xf32, #tpu.memory_space<vmem>>, vector<2x256xf32>
      tpu.vector_store %arg8[%c0_22, %c0_23], %31 {strides = array<i32>} : memref<2x256xf32, #tpu.memory_space<vmem>>, vector<2x256xf32>,
      %c0_24 = arith.constant 0 : index
      %c0_25 = arith.constant 0 : index
      %33 = vector.load %arg6[%c0_24, %c0_25] : memref<256x128xf32, #tpu.memory_space<vmem>>, vector<256x128xf32>
      %cst_26 = arith.constant dense<0.000000e+00> : vector<2x128xf32>
      %34 = tpu.matmul %31, %33, %cst_26 {dimension_numbers = #tpu.dot_dimension_numbers<[1], [0], [0], [1], [0, 0, 1, 1], [], []>} : vector<2x256xf32>, vector<256x128xf32>, vector<2x128xf32> -> vector<2x128xf32>
      %c0_27 = arith.constant 0 : index
      %c0_28 = arith.constant 0 : index
      %35 = vector.load %arg7[%c0_27, %c0_28] : memref<1x128xf32, #tpu.memory_space<vmem>>, vector<1x128xf32>
      %36 = vector.broadcast %35 : vector<1x128xf32> to vector<2x128xf32>
      %37 = arith.addf %34, %36 : vector<2x128xf32>
      %cst_29 = arith.constant dense<0xFF800000> : vector<128xf32>
      %38 = vector.multi_reduction <maximumf>, %37, %cst_29 [0] : vector<2x128xf32> to vector<128xf32>
      %39 = vector.shape_cast %38 : vector<128xf32> to vector<1x128xf32>
      %40 = vector.broadcast %39 : vector<1x128xf32> to vector<2x128xf32>
      %41 = arith.subf %37, %40 : vector<2x128xf32>
      %42 = math.exp %41 : vector<2x128xf32>
      %cst_30 = arith.constant dense<0.000000e+00> : vector<128xf32>
      %43 = vector.multi_reduction <add>, %42, %cst_30 [0] : vector<2x128xf32> to vector<128xf32>
      %44 = vector.shape_cast %43 : vector<128xf32> to vector<1x128xf32>
      %45 = vector.broadcast %44 : vector<1x128xf32> to vector<2x128xf32>
      %46 = arith.divf %42, %45 : vector<2x128xf32>
      %c0_31 = arith.constant 0 : index
      %c0_32 = arith.constant 0 : index
      %47 = vector.load %arg9[%c0_31, %c0_32] : memref<2x128xf32, #tpu.memory_space<vmem>>, vector<2x128xf32>
      tpu.vector_store %arg9[%c0_31, %c0_32], %46 {strides = array<i32>} : memref<2x128xf32, #tpu.memory_space<vmem>>, vector<2x128xf32>,
    } else {
    }
    return
  }
  func.func @transform_0(%arg0: i32) -> (i32, i32) {
    %c0_i32 = arith.constant 0 : i32
    %c0_i32_0 = arith.constant 0 : i32
    %c0_i32_1 = arith.constant 0 : i32
    return %c0_i32, %c0_i32_0 : i32, i32
  }
  func.func @transform_1(%arg0: i32) -> (i32, i32) {
    %c0_i32 = arith.constant 0 : i32
    %c0_i32_0 = arith.constant 0 : i32
    return %c0_i32, %arg0 : i32, i32
  }
  func.func @transform_2(%arg0: i32) -> (i32, i32) {
    %c0_i32 = arith.constant 0 : i32
    %c0_i32_0 = arith.constant 0 : i32
    return %c0_i32, %arg0 : i32, i32
  }
  func.func @transform_3(%arg0: i32) -> (i32, i32) {
    %c0_i32 = arith.constant 0 : i32
    %c0_i32_0 = arith.constant 0 : i32
    return %arg0, %c0_i32 : i32, i32
  }
  func.func @transform_4(%arg0: i32) -> (i32, i32) {
    %c0_i32 = arith.constant 0 : i32
    %c0_i32_0 = arith.constant 0 : i32
    %c0_i32_1 = arith.constant 0 : i32
    return %c0_i32, %c0_i32_0 : i32, i32
  }
  func.func @transform_5(%arg0: i32) -> (i32, i32) {
    %c0_i32 = arith.constant 0 : i32
    %c0_i32_0 = arith.constant 0 : i32
    %c0_i32_1 = arith.constant 0 : i32
    return %c0_i32, %c0_i32_0 : i32, i32
  }
  func.func @transform_6(%arg0: i32) -> (i32, i32) {
    %c0_i32 = arith.constant 0 : i32
    %c0_i32_0 = arith.constant 0 : i32
    %c0_i32_1 = arith.constant 0 : i32
    return %c0_i32, %c0_i32_0 : i32, i32
  }
  func.func @transform_7(%arg0: i32) -> (i32, i32) {
    %c0_i32 = arith.constant 0 : i32
    %c0_i32_0 = arith.constant 0 : i32
    %c0_i32_1 = arith.constant 0 : i32
    return %c0_i32, %c0_i32_0 : i32, i32
  }
  func.func @transform_8(%arg0: i32) -> (i32, i32) {
    %c0_i32 = arith.constant 0 : i32
    %c0_i32_0 = arith.constant 0 : i32
    %c0_i32_1 = arith.constant 0 : i32
    return %c0_i32, %c0_i32_0 : i32, i32
  }
}

</mosaic_0001>

<bundles_post_ra>
// kernel: semantic_eeg_extractor.1
= control target key start
LH: loop header
LB: loop body
LE: loop exit
PB: predicated region body
PF: predicated region fallthrough
CT: control target
= control target key end

     0   :  { %s2614_s0 = inlined_call_operand.vmem [shape: bf16[2,128], index: 0, kind: input, shape index: {}]   ;;  %s2615_s1 = inlined_call_operand.hbm [shape: bf16[128,4096], index: 1, kind: input, shape index: {}]   ;;  %s2616_s2 = inlined_call_operand.hbm [shape: f32[1,4096], index: 2, kind: input, shape index: {}]   ;;  %s2617_s3 = inlined_call_operand.hbm [shape: bf16[4096,256], index: 3, kind: input, shape index: {}]   ;;  %s2618_s4 = inlined_call_operand.hbm [shape: f32[1,256], index: 4, kind: input, shape index: {}]   ;;  %s2619_s5 = inlined_call_operand.hbm [shape: f32[256,128], index: 5, kind: input, shape index: {}]   ;;  %s2620_s6 = inlined_call_operand.hbm [shape: f32[1,128], index: 6, kind: input, shape index: {}]   ;;  %s2621_s7 = inlined_call_operand.vmem [shape: f32[2,256], index: 7, kind: output, shape index: {0}]   ;;  %s2622_s8 = inlined_call_operand.hbm [shape: f32[2,128], index: 8, kind: output, shape index: {1}]  }
   0x1   :  { %2632 = sst [smem:[#allocation22_spill]] %s2615_s1 }
   0x2   :  { %2633 = sst [smem:[#allocation23_spill]] %s2616_s2 }
   0x3   :  { %2634 = sst [smem:[#allocation24_spill]] %s2618_s4 }
   0x4   :  { %14 = vsyncpa [#allocation4], 0 }
   0x5   :  { %16 = vsyncpa [#allocation4 + $0x1], 0 }
   0x6   :  { %17 = vsyncpa [#allocation7], 0 }
   0x7   :  { %19 = vsyncpa [#allocation7 + $0x1], 0 }
   0x8   :  { %20 = vsyncpa [#allocation10], 0 }
   0x9   :  { %21 = vsyncpa [#allocation13], 0 }
   0xa   :  { %22 = vsyncpa [#allocation5], 0  ;;  %s2239_s27 = smov 0   ;;  %s2241_s28 = smov 0  }
   0xb   :  { %s2243_s29 = smov 0   ;;  %s2245_s30 = smov 0  }
   0xc LB: > { %2635 = sst [smem:[#allocation20_spill]] %s2173_s29  ;;  %s2258_s9 = sadd.s32 4294967295, %s2177_s30   ;;  %s2177_s30 = sphi %s2245_s30, %s2664_s30   ;;  %s2173_s29 = sphi %s2243_s29, %s2661_s29   ;;  %s2169_s28 = sphi %s2241_s28, %s2663_s28   ;;  %s2165_s27 = sphi %s2239_s27, %s2662_s27  }
   0xd   : > { %p69_p0 = scmp.ne.s32.totalorder %s2169_s28, %s2165_s27  ;;  %p2623_p1 = scmp.eq.s32.totalorder %s2258_s9, 0 }
   0xe   : > { %p1534_p2 = scmp.ge.s32.totalorder %s2177_s30, 1  ;;  %p237_p3 = scmp.lt.s32.totalorder %s2177_s30, 9 }
   0xf   : > { %p2267_p5 = por %p2623_p1, %p69_p0  ;;  %s2179_s12 = smov [#allocation9]  }
  0x10   : > { %p2271_p6 = pnand %p1534_p2, %p237_p3  ;;  %s253_s13 = sshll.u32 %s2179_s12, 4  ;;  %s254_s13 = int_to_ptr.vmem [resolvable:$true] %s253_s13 }
  0x11   : > { %s2636_s10 = scalar_select %p2267_p5, 1, 0 }
  0x12   : > { %s2637_s11 = scalar_select %p2271_p6, 1, 0 }
  0x13   : > { %p1720_p7 = pneg %p2271_p6  ;;  %s2278_s14 = sadd.s32 1, %s2177_s30  }
  0x14   : > { %s53_s16 = ssub.s32 %s2177_s30, %s2278_s14  ;;  %s56_s18 = sadd.s32 1, %s2173_s29 }
  0x15   : > { %p2282_p8 = pnand %p1720_p7, %p2623_p1  ;;  %p2288_p9 = scmp.eq.s32.totalorder %s53_s16, 0 }
  0x16   : > { %p63_p10 = scmp.ne.s32.totalorder %s2173_s29, %s2169_s28  ;;  %s1952_s19 = scalar_lea.vmem %s254_s13, 32 }
  0x17   : > { %s2638_s15 = scalar_select %p2282_p8, 1, 0 }
  0x18   : > { %p2624_p11 = pneg %p2282_p8  ;;  %p1953_p12 = scmp.ne.s32.totalorder %s254_s13, %s1952_s19 }
  0x19   : > { %p1960_p2 = scmp.lt.s32.totalorder %s254_s13, %s254_s13  ;;  %p1961_p3 = scmp.lt.s32.totalorder %s1952_s19, %s1952_s19 }
  0x1a   : > { %p1955_p13 = pnand %p1953_p12, %p2624_p11 }
  0x1b   : > { %p1962_p7 = por %p1961_p3, %p1960_p2 }
  0x1c   : > { %p1956_p0 = pneg %p1955_p13 }
  0x1e   : > { %p1963_p4 = pnand %p1962_p7, %p1956_p0 }
  0x20   : > { %1966 = shalt.err (!%p1963_p4)
}
  0x21   : > { %s2640_s4 = sld [smem:[#allocation24_spill]]  ;;  %p64_p12 = scmp.eq.s32.totalorder %s2177_s30, 0 }
  0x22   : > { %s2308_s22 = scalar_select %p2288_p9, %s2173_s29, %s56_s18  }
  0x23   : > { %p1743_p4 = scmp.lt.s32.totalorder %s2177_s30, 8  ;;  %s2313_s23 = sand.u32 1, %s2173_s29  }
  0x24   : > { %2641 = sst [smem:[#allocation21_spill]] %s2308_s22  ;;  %s309_s24 = sand.u32 1, %s2177_s30  }
  0x25   : > { %p65_p13 = por %p64_p12, %p63_p10  ;;  %s1542_s26 = sshll.u32 %s2313_s23, 2 }
  0x26   : > { %s1660_s12 = sshll.u32 %s2177_s30, 6  ;;  %s2643_s2 = sld [smem:[#allocation23_spill]] }
  0x27   : > { %1723 = dma.hbm_to_vmem [thread:$0]  (!%p2282_p8), %s2640_s4, 32, %s254_s13, [#allocation10]  }
  0x28   : > { %p2321_p0 = pnand %p1743_p4, %p65_p13  ;;  %s313_s13 = scalar_lea.vmem [#allocation6], %s1542_s26 }
  0x29   : > { %s321_s16 = sshll.u32 %s313_s13, 4  ;;  %s2332_s21 = scalar_lea.sflag [#allocation7], %s309_s24  ;;  %s322_s16 = int_to_ptr.vmem [resolvable:$true] %s321_s16 }
  0x2a   : > { %p2338_p10 = pneg %p2321_p0 }
  0x2c   : > { %s2329_s19 = scalar_lea.hbm %s2643_s2, %s1660_s12  ;;  %s1972_s13 = scalar_lea.hbm %s2643_s2, 512 }
  0x2d   : > { %s1967_s25 = scalar_lea.hbm %s2329_s19, 64  ;;  %p1973_p7 = scmp.lt.s32.totalorder %s2329_s19, %s2643_s2 }
  0x2e   : > { %p1968_p9 = scmp.ne.s32.totalorder %s2329_s19, %s1967_s25  ;;  %p1974_p12 = scmp.lt.s32.totalorder %s1972_s13, %s1967_s25 }
  0x30   : > { %p1970_p2 = pnand %p2338_p10, %p1968_p9  ;;  %p1975_p4 = por %p1974_p12, %p1973_p7 }
  0x32   : > { %p1971_p3 = pneg %p1970_p2 }
  0x34   : > { %p1976_p13 = pnand %p1975_p4, %p1971_p3 }
  0x36   : > { %1979 = shalt.err (!%p1976_p13)
}
  0x37   : > { %s1980_s24 = scalar_lea.vmem %s322_s16, 64  ;;  %s2180_s20 = smov [#allocation6]  }
  0x38   : > { %p1981_p1 = scmp.ne.s32.totalorder %s322_s16, %s1980_s24  ;;  %s1985_s22 = sshll.u32 %s2180_s20, 4  ;;  %s1986_s22 = int_to_ptr.vmem [resolvable:$false] %s1985_s22 }
  0x39   : > { %s1987_s29 = scalar_lea.vmem %s1986_s22, 128  ;;  %p1988_p9 = scmp.lt.s32.totalorder %s322_s16, %s1986_s22 }
  0x3a   : > { %p1983_p11 = pnand %p1981_p1, %p2338_p10  ;;  %p1989_p2 = scmp.lt.s32.totalorder %s1987_s29, %s1980_s24 }
  0x3c   : > { %p1984_p5 = pneg %p1983_p11  ;;  %p1990_p6 = por %p1989_p2, %p1988_p9 }
  0x3e   : > { %p1991_p8 = pnand %p1990_p6, %p1984_p5 }
  0x40   : > { %1994 = shalt.err (!%p1991_p8)
}
  0x41   : > { %1736 = dma.hbm_to_vmem [thread:$0]  (!%p2321_p0), %s2329_s19, 64, %s322_s16, %s2332_s21  }
  0x42   : > { %s2181_s25 = smov [#allocation11]   ;;  %p2645_p11 = scmp.ne.s32.totalorder %s2638_s15, 0 }
  0x43   : > { %s263_s26 = sshll.u32 %s2181_s25, 4  ;;  %s264_s26 = int_to_ptr.vmem [resolvable:$true] %s263_s26 }
  0x44   : > { %s2006_s12 = scalar_lea.vmem %s264_s26, 4096  ;;  %p2646_p3 = pneg %p2645_p11 }
  0x45   : > { %p2007_p1 = scmp.ne.s32.totalorder %s264_s26, %s2006_s12  ;;  %p2014_p4 = scmp.lt.s32.totalorder %s264_s26, %s264_s26 }
  0x46   : > { %p2015_p13 = scmp.lt.s32.totalorder %s2006_s12, %s2006_s12 }
  0x47   : > { %p2009_p7 = pnand %p2007_p1, %p2646_p3 }
  0x48   : > { %p2016_p9 = por %p2015_p13, %p2014_p4 }
  0x49   : > { %p2010_p12 = pneg %p2009_p7 }
  0x4b   : > { %p2017_p5 = pnand %p2016_p9, %p2010_p12 }
  0x4d   : > { %2020 = shalt.err (!%p2017_p5)
}
  0x4e   : > { %s2630_s29 = smov 128   ;;  %s2631_s22 = smov 8  }
  0x4f   : > { %1726 = dma.hbm_to_vmem [thread:$0]  (!%p2645_p11), %s2619_s5, 4096, %s264_s26, [#allocation10], %s2630_s29, %s2630_s29, %s2631_s22  }
  0x50   : > { %s2184_s20 = smov [#allocation12]   ;;  %p2647_p8 = pmov %p2646_p3 }
  0x51   : > { %s277_s13 = sshll.u32 %s2184_s20, 4  ;;  %s278_s13 = int_to_ptr.vmem [resolvable:$true] %s277_s13 }
  0x52   : > { %s2032_s17 = scalar_lea.vmem %s278_s13, 16  ;;  %s2039_s18 = scalar_lea.vmem %s278_s13, 32 }
  0x53   : > { %p2033_p6 = scmp.ne.s32.totalorder %s278_s13, %s2032_s17  ;;  %p2040_p3 = scmp.lt.s32.totalorder %s278_s13, %s278_s13 }
  0x54   : > { %p2041_p7 = scmp.lt.s32.totalorder %s2039_s18, %s2032_s17 }
  0x55   : > { %p2035_p2 = pnand %p2033_p6, %p2647_p8 }
  0x56   : > { %p2042_p12 = por %p2041_p7, %p2040_p3 }
  0x57   : > { %p2036_p1 = pneg %p2035_p2 }
  0x59   : > { %p2043_p4 = pnand %p2042_p12, %p2036_p1 }
  0x5b   : > { %2046 = shalt.err (!%p2043_p4)
}
  0x5c   : > { %1729 = dma.hbm_to_vmem [thread:$0]  (!%p2645_p11), %s2620_s6, 16, %s278_s13, [#allocation13]  }
  0x5d   : > { %s1659_s26 = sshll.u32 %s2177_s30, 8  ;;  %s2648_s12 = sshll.u32 %s2313_s23, 8 }
  0x5e   : > { %s292_s16 = scalar_lea.vmem [#allocation3], %s2648_s12  ;;  %s2649_s1 = sld [smem:[#allocation22_spill]] }
  0x5f   : > { %s299_s19 = sshll.u32 %s292_s16, 4  ;;  %s289_s15 = scalar_lea.sflag [#allocation4], %s2313_s23  ;;  %s2384_s19 = int_to_ptr.vmem [resolvable:$true] %s299_s19 }
  0x64   : > { %s2382_s17 = scalar_lea.hbm %s2649_s1, %s1659_s26  ;;  %s2052_s25 = scalar_lea.hbm %s2649_s1, 32768 }
  0x65   : > { %s2047_s18 = scalar_lea.hbm %s2382_s17, 4096  ;;  %p2053_p5 = scmp.lt.s32.totalorder %s2382_s17, %s2649_s1 }
  0x66   : > { %p2048_p13 = scmp.ne.s32.totalorder %s2382_s17, %s2047_s18  ;;  %p2054_p6 = scmp.lt.s32.totalorder %s2052_s25, %s2047_s18 }
  0x68   : > { %p2050_p9 = pnand %p2048_p13, %p2338_p10  ;;  %p2055_p8 = por %p2054_p6, %p2053_p5 }
  0x6a   : > { %p2051_p11 = pneg %p2050_p9 }
  0x6c   : > { %p2056_p2 = pnand %p2055_p8, %p2051_p11 }
  0x6e   : > { %2059 = shalt.err (!%p2056_p2)
}
  0x6f   : > { %s2060_s29 = scalar_lea.vmem %s2384_s19, 4096  ;;  %s2185_s26 = smov [#allocation3]  }
  0x70   : > { %p2061_p1 = scmp.ne.s32.totalorder %s2384_s19, %s2060_s29  ;;  %s2065_s20 = sshll.u32 %s2185_s26, 4  ;;  %s2066_s20 = int_to_ptr.vmem [resolvable:$false] %s2065_s20 }
  0x71   : > { %s2067_s13 = scalar_lea.vmem %s2066_s20, 8192  ;;  %p2068_p12 = scmp.lt.s32.totalorder %s2384_s19, %s2066_s20 }
  0x72   : > { %p2063_p3 = pnand %p2061_p1, %p2338_p10  ;;  %p2069_p4 = scmp.lt.s32.totalorder %s2067_s13, %s2060_s29 }
  0x74   : > { %p2064_p7 = pneg %p2063_p3  ;;  %p2070_p13 = por %p2069_p4, %p2068_p12 }
  0x76   : > { %p2071_p9 = pnand %p2070_p13, %p2064_p7 }
  0x78   : > { %2074 = shalt.err (!%p2071_p9)
}
  0x79   : > { %s2186_s18 = smov 2048   ;;  %s2187_s24 = smov 256  }
  0x7a   : > { %s2188_s25 = smov 16   ;;  %s1662_s12 = sshll.u32 %s2177_s30, 13 }
  0x7b   : > { %1733 = dma.hbm_to_vmem [thread:$0]  (!%p2321_p0), %s2382_s17, 4096, %s2384_s19, %s289_s15, %s2186_s18, %s2187_s24, %s2188_s25  }
  0x7c   : > { %s2650_s16 = sshll.u32 %s2313_s23, 9  ;;  %s2415_s22 = scalar_lea.hbm %s2617_s3, %s1662_s12 }
  0x7d   : > { %s332_s26 = scalar_lea.vmem [#allocation8], %s2650_s16  ;;  %s2075_s1 = scalar_lea.hbm %s2415_s22, 8192 }
  0x7e   : > { %s340_s29 = sshll.u32 %s332_s26, 4  ;;  %p2076_p11 = scmp.ne.s32.totalorder %s2415_s22, %s2075_s1  ;;  %s341_s29 = int_to_ptr.vmem [resolvable:$true] %s340_s29 }
  0x7f   : > { %s2080_s30 = scalar_lea.hbm %s2617_s3, 65536  ;;  %p2081_p8 = scmp.lt.s32.totalorder %s2415_s22, %s2617_s3 }
  0x80   : > { %p2078_p5 = pnand %p2076_p11, %p2338_p10  ;;  %p2082_p2 = scmp.lt.s32.totalorder %s2080_s30, %s2075_s1 }
  0x82   : > { %p2079_p6 = pneg %p2078_p5  ;;  %p2083_p1 = por %p2082_p2, %p2081_p8 }
  0x84   : > { %p2084_p3 = pnand %p2083_p1, %p2079_p6 }
  0x86   : > { %2087 = shalt.err (!%p2084_p3)
}
  0x87   : > { %s2088_s15 = scalar_lea.vmem %s341_s29, 8192  ;;  %s2189_s18 = smov [#allocation8]  }
  0x88   : > { %p2089_p7 = scmp.ne.s32.totalorder %s341_s29, %s2088_s15  ;;  %s2093_s24 = sshll.u32 %s2189_s18, 4  ;;  %s2094_s24 = int_to_ptr.vmem [resolvable:$false] %s2093_s24 }
  0x89   : > { %s2095_s25 = scalar_lea.vmem %s2094_s24, 16384  ;;  %p2096_p13 = scmp.lt.s32.totalorder %s341_s29, %s2094_s24 }
  0x8a   : > { %p2091_p12 = pnand %p2089_p7, %p2338_p10  ;;  %p2097_p9 = scmp.lt.s32.totalorder %s2095_s25, %s2088_s15 }
  0x8c   : > { %p2092_p4 = pneg %p2091_p12  ;;  %p2098_p11 = por %p2097_p9, %p2096_p13 }
  0x8e   : > { %p2099_p5 = pnand %p2098_p11, %p2092_p4 }
  0x90   : > { %2102 = shalt.err (!%p2099_p5)
}
  0x91   : > { %s2651_s1 = smov 8   ;;  %s2652_s2 = smov 128  }
  0x92   : > { %1739 = dma.hbm_to_vmem [thread:$0]  (!%p2321_p0), %s2415_s22, 8192, %s341_s29, %s2332_s21, %s2652_s2, %s2652_s2, %s2651_s1  }
  0x93   : > { %p2653_p10 = scmp.ne.s32.totalorder %s2637_s11, 0 }
  0x94   : > { %s354_s4 = sand.u32 (!%p2653_p10), 1, %s2169_s28   ;;  %p2654_p6 = scmp.ne.s32.totalorder (!%p2653_p10), %s2636_s10, 0 }
  0x95   : > { %352 = sbr.rel (%p2653_p10) target bundleno = 923 (0x39b), region = 48  ;;  %s1550_s12 = sshll.u32 (!%p2653_p10), %s354_s4, 8 }
  0x96   : > { %s355_s16 = scalar_lea.sflag (!%p2653_p10), [#allocation4], %s354_s4  ;;  %s2440_s26 = scalar_lea.vmem (!%p2653_p10), [#allocation3], %s1550_s12 }
  0x9a   : > { %2144 = dma.done.wait (%p2654_p6), %s355_s16, 4096  }
  0x9b   : > { %2146 = vsyncadd (%p2654_p6), %s355_s16, 4294963200  ;;  %s363_s27 = sand.u32 1, %s2258_s9   ;;  %s1551_s20 = sshll.u32 %s354_s4, 2 }
  0x9c   : > { %s364_s21 = scalar_lea.sflag [#allocation7], %s363_s27  ;;  %s2447_s22 = scalar_lea.vmem [#allocation6], %s1551_s20 }
  0x9d   : > { %2148 = dma.done.wait (%p2654_p6), %s364_s21, 8256  }
  0x9e   : > { %2150 = vsyncadd (%p2654_p6), %s364_s21, 4294959040  ;;  %s1552_s11 = sshll.u32 %s354_s4, 9  ;;  %p2655_p0 = scmp.eq.s32.totalorder %s2258_s9, 0 }
  0x9f   : > { %s2453_s29 = scalar_lea.vmem [#allocation8], %s1552_s11 }
  0xa0   : > { %2152 = dma.done.wait (%p2655_p0), [#allocation10], 4128   ;;  %p2656_p8 = pmov %p2655_p0 }
  0xa1   : > { %p2657_p2 = pmov %p2655_p0 }
  0xa2   : > { %2154 = vsyncadd (%p2656_p8), [#allocation10], 4294963168 }
  0xa3   : > { %2156 = dma.done.wait (%p2657_p2), [#allocation13], 16   ;;  %p2658_p1 = pmov %p2655_p0 }
  0xa4   : > { %p2659_p3 = scmp.ne.s32.totalorder %s2258_s9, 0 }
  0xa5   : > { %2158 = vsyncadd (%p2658_p1), [#allocation13], 4294967280 }
  0xa6   : > { %433 = sbr.rel (%p2659_p3) target bundleno = 173 (0xad), region = 76 }
  0xab   : > { %v2190_v0 = vmov 0.0  }
  0xac   : > { %434 = vst [vmem:[#allocation2] sm:$0xf] %v2190_v0 }
  0xad PF: > { %v1793_v1 = vld [vmem:[%s2440_s26 + $0xe4] ss:$16 sps:$4 sm:$0xff]   ;;  %v1795_v2 = vld [vmem:[%s2440_s26 + $0xec] ss:$16 sps:$4 sm:$0xff]   ;;  %v2191_v3 = vmov 0   ;;  %p1653_p7 = scmp.ne.s32.totalorder %s2258_s9, 7 }
  0xae   : > { %682 = vmatprep.mubr.bf16.mxu0 %v2191_v3  ;;  %723 = vmatprep.mubr.bf16.mxu1 %v2191_v3  ;;  %v1797_v4 = vld [vmem:[%s2440_s26 + $0xe0] ss:$16 sps:$4 sm:$0xff]   ;;  %v1798_v5 = vld [vmem:[%s2440_s26 + $0xe8] ss:$16 sps:$4 sm:$0xff]   ;;  %v1799_v6 = vld [vmem:[%s2440_s26 + $0xc4] ss:$16 sps:$4 sm:$0xff]  }
  0xaf   : > { %650 = vmatprep.subr.bf16.mxu0 %v1793_v1  ;;  %691 = vmatprep.subr.bf16.mxu1 %v1795_v2  ;;  %v1801_v7 = vld [vmem:[%s2440_s26 + $0xcc] ss:$16 sps:$4 sm:$0xff]   ;;  %v1803_v8 = vld [vmem:[%s2440_s26 + $0xc0] ss:$16 sps:$4 sm:$0xff]   ;;  %v1804_v9 = vld [vmem:[%s2440_s26 + $0xc8] ss:$16 sps:$4 sm:$0xff]  }
  0xb0   : > { %651 = vmatpush1.bf16.msra.mxu0 %v1797_v4  ;;  %692 = vmatpush1.bf16.msra.mxu1 %v1798_v5  ;;  %v1805_v10 = vld [vmem:[%s2440_s26 + $0xa4] ss:$16 sps:$4 sm:$0xff]   ;;  %v1807_v11 = vld [vmem:[%s2440_s26 + $0xac] ss:$16 sps:$4 sm:$0xff]   ;;  %v1809_v12 = vld [vmem:[%s2440_s26 + $0xa0] ss:$16 sps:$4 sm:$0xff]  }
  0xb1   : > { %652 = vmatprep.subr.bf16.mxu0 %v1799_v6  ;;  %693 = vmatprep.subr.bf16.mxu1 %v1801_v7  ;;  %v1810_v13 = vld [vmem:[%s2440_s26 + $0xa8] ss:$16 sps:$4 sm:$0xff]   ;;  %v1811_v14 = vld [vmem:[%s2440_s26 + $0x84] ss:$16 sps:$4 sm:$0xff]   ;;  %v1813_v15 = vld [vmem:[%s2440_s26 + $0x8c] ss:$16 sps:$4 sm:$0xff]  }
  0xb2   : > { %v1815_v16 = vld [vmem:[%s2440_s26 + $0x80] ss:$16 sps:$4 sm:$0xff]   ;;  %v1816_v17 = vld [vmem:[%s2440_s26 + $0x88] ss:$16 sps:$4 sm:$0xff]   ;;  %v1817_v18 = vld [vmem:[%s2440_s26 + $0x64] ss:$16 sps:$4 sm:$0xff]  }
  0xb3   : > { %v1819_v19 = vld [vmem:[%s2440_s26 + $0x6c] ss:$16 sps:$4 sm:$0xff]   ;;  %v1821_v20 = vld [vmem:[%s2440_s26 + $0x60] ss:$16 sps:$4 sm:$0xff]   ;;  %v1822_v21 = vld [vmem:[%s2440_s26 + $0x68] ss:$16 sps:$4 sm:$0xff]  }
  0xb4   : > { %653 = vmatpush1.bf16.msra.mxu0 %v1803_v8  ;;  %694 = vmatpush1.bf16.msra.mxu1 %v1804_v9  ;;  %v1823_v22 = vld [vmem:[%s2440_s26 + $0x44] ss:$16 sps:$4 sm:$0xff]   ;;  %v1825_v23 = vld [vmem:[%s2440_s26 + $0x4c] ss:$16 sps:$4 sm:$0xff]   ;;  %v1827_v24 = vld [vmem:[%s2440_s26 + $0x40] ss:$16 sps:$4 sm:$0xff]  }
  0xb5   : > { %654 = vmatprep.subr.bf16.mxu0 %v1805_v10  ;;  %695 = vmatprep.subr.bf16.mxu1 %v1807_v11  ;;  %v1828_v25 = vld [vmem:[%s2440_s26 + $0x48] ss:$16 sps:$4 sm:$0xff]   ;;  %v1829_v26 = vld [vmem:[%s2440_s26 + $0x24] ss:$16 sps:$4 sm:$0xff]   ;;  %v1831_v27 = vld [vmem:[%s2440_s26 + $0x2c] ss:$16 sps:$4 sm:$0xff]  }
  0xb6   : > { %v1833_v28 = vld [vmem:[%s2440_s26 + $0x20] ss:$16 sps:$4 sm:$0xff]   ;;  %v1834_v29 = vld [vmem:[%s2440_s26 + $0x28] ss:$16 sps:$4 sm:$0xff]   ;;  %v1835_v30 = vld [vmem:[%s2440_s26 + $0x4] ss:$16 sps:$4 sm:$0xff]  }
  0xb7   : > { %v1837_v31 = vld [vmem:[%s2440_s26 + $0xc] ss:$16 sps:$4 sm:$0xff]   ;;  %v1839_v32 = vld [vmem:[%s2440_s26] ss:$16 sps:$4 sm:$0xff]   ;;  %v1840_v33 = vld [vmem:[%s2440_s26 + $0x8] ss:$16 sps:$4 sm:$0xff]  }
  0xb8   : > { %655 = vmatpush1.bf16.msra.mxu0 %v1809_v12  ;;  %696 = vmatpush1.bf16.msra.mxu1 %v1810_v13  ;;  %v1843_v34 = vld [vmem:[%s2453_s29 + $0x74] ss:$8 sps:$4 sm:$0xff]   ;;  %v1841_v37 = vld [vmem:[%s2453_s29 + $0x70] ss:$8 sps:$4 sm:$0xff]   ;;  %v1849_v39 = vld [vmem:[%s2453_s29 + $0x64] ss:$8 sps:$4 sm:$0xff]  }
  0xb9   : > { %656 = vmatprep.subr.bf16.mxu0 %v1811_v14  ;;  %697 = vmatprep.subr.bf16.mxu1 %v1813_v15  ;;  %v1846_v35 = vld [vmem:[%s2453_s29 + $0x174] ss:$8 sps:$4 sm:$0xff]   ;;  %v1844_v38 = vld [vmem:[%s2453_s29 + $0x170] ss:$8 sps:$4 sm:$0xff]   ;;  %v1852_v40 = vld [vmem:[%s2453_s29 + $0x164] ss:$8 sps:$4 sm:$0xff]  }
  0xba   : > { %v435_v36 = vld [vmem:[%s2614_s0] sm:$0x1]  ;;  %v1847_v41 = vld [vmem:[%s2453_s29 + $0x60] ss:$8 sps:$4 sm:$0xff]   ;;  %v1853_v45 = vld [vmem:[%s2453_s29 + $0x50] ss:$8 sps:$4 sm:$0xff]  }
  0xbb   : > { %v1850_v42 = vld [vmem:[%s2453_s29 + $0x160] ss:$8 sps:$4 sm:$0xff]   ;;  %v1855_v43 = vld [vmem:[%s2453_s29 + $0x54] ss:$8 sps:$4 sm:$0xff]   ;;  %v1856_v46 = vld [vmem:[%s2453_s29 + $0x150] ss:$8 sps:$4 sm:$0xff]  }
  0xbc   : > { %657 = vmatpush1.bf16.msra.mxu0 %v1815_v16  ;;  %698 = vmatpush1.bf16.msra.mxu1 %v1816_v17  ;;  %v1858_v44 = vld [vmem:[%s2453_s29 + $0x154] ss:$8 sps:$4 sm:$0xff]   ;;  %v1861_v47 = vld [vmem:[%s2453_s29 + $0x44] ss:$8 sps:$4 sm:$0xff]   ;;  %v1859_v49 = vld [vmem:[%s2453_s29 + $0x40] ss:$8 sps:$4 sm:$0xff]  }
  0xbd   : > { %658 = vmatprep.subr.bf16.mxu0 %v1817_v18  ;;  %699 = vmatprep.subr.bf16.mxu1 %v1819_v19  ;;  %v1864_v48 = vld [vmem:[%s2453_s29 + $0x144] ss:$8 sps:$4 sm:$0xff]   ;;  %v1862_v50 = vld [vmem:[%s2453_s29 + $0x140] ss:$8 sps:$4 sm:$0xff]   ;;  %v1867_v51 = vld [vmem:[%s2453_s29 + $0x34] ss:$8 sps:$4 sm:$0xff]  }
  0xbe   : > { %v1870_v52 = vld [vmem:[%s2453_s29 + $0x134] ss:$8 sps:$4 sm:$0xff]   ;;  %v1865_v53 = vld [vmem:[%s2453_s29 + $0x30] ss:$8 sps:$4 sm:$0xff]   ;;  %v1873_v55 = vld [vmem:[%s2453_s29 + $0x24] ss:$8 sps:$4 sm:$0xff]  }
  0xbf   : > { %v1868_v54 = vld [vmem:[%s2453_s29 + $0x130] ss:$8 sps:$4 sm:$0xff]   ;;  %v1876_v56 = vld [vmem:[%s2453_s29 + $0x124] ss:$8 sps:$4 sm:$0xff]   ;;  %v1871_v57 = vld [vmem:[%s2453_s29 + $0x20] ss:$8 sps:$4 sm:$0xff]  }
  0xc0   : > { %659 = vmatpush1.bf16.msra.mxu0 %v1821_v20  ;;  %700 = vmatpush1.bf16.msra.mxu1 %v1822_v21  ;;  %v1874_v58 = vld [vmem:[%s2453_s29 + $0x120] ss:$8 sps:$4 sm:$0xff]   ;;  %v1879_v59 = vld [vmem:[%s2453_s29 + $0x14] ss:$8 sps:$4 sm:$0xff]   ;;  %v1877_v61 = vld [vmem:[%s2453_s29 + $0x10] ss:$8 sps:$4 sm:$0xff]  }
  0xc1   : > { %660 = vmatprep.subr.bf16.mxu0 %v1823_v22  ;;  %701 = vmatprep.subr.bf16.mxu1 %v1825_v23  ;;  %v1882_v60 = vld [vmem:[%s2453_s29 + $0x114] ss:$8 sps:$4 sm:$0xff]   ;;  %v1880_v62 = vld [vmem:[%s2453_s29 + $0x110] ss:$8 sps:$4 sm:$0xff]   ;;  %v1885_v63 = vld [vmem:[%s2453_s29 + $0x4] ss:$8 sps:$4 sm:$0xff]  }
  0xc2   : > { %v1888_v0 = vld [vmem:[%s2453_s29 + $0x104] ss:$8 sps:$4 sm:$0xff]   ;;  %v1883_v1 = vld [vmem:[%s2453_s29] ss:$8 sps:$4 sm:$0xff]   ;;  %v1891_v3 = vld [vmem:[%s2453_s29 + $0xf4] ss:$8 sps:$4 sm:$0xff]  }
  0xc3   : > { %v1886_v2 = vld [vmem:[%s2453_s29 + $0x100] ss:$8 sps:$4 sm:$0xff]   ;;  %v1894_v4 = vld [vmem:[%s2453_s29 + $0x1f4] ss:$8 sps:$4 sm:$0xff]   ;;  %v1889_v5 = vld [vmem:[%s2453_s29 + $0xf0] ss:$8 sps:$4 sm:$0xff]  }
  0xc4   : > { %661 = vmatpush1.bf16.msra.mxu0 %v1827_v24  ;;  %702 = vmatpush1.bf16.msra.mxu1 %v1828_v25  ;;  %v1892_v6 = vld [vmem:[%s2453_s29 + $0x1f0] ss:$8 sps:$4 sm:$0xff]   ;;  %v1897_v7 = vld [vmem:[%s2453_s29 + $0xe4] ss:$8 sps:$4 sm:$0xff]   ;;  %v1895_v9 = vld [vmem:[%s2453_s29 + $0xe0] ss:$8 sps:$4 sm:$0xff]  }
  0xc5   : > { %662 = vmatprep.subr.bf16.mxu0 %v1829_v26  ;;  %703 = vmatprep.subr.bf16.mxu1 %v1831_v27  ;;  %v1900_v8 = vld [vmem:[%s2453_s29 + $0x1e4] ss:$8 sps:$4 sm:$0xff]   ;;  %v1898_v10 = vld [vmem:[%s2453_s29 + $0x1e0] ss:$8 sps:$4 sm:$0xff]   ;;  %v1903_v11 = vld [vmem:[%s2453_s29 + $0xd4] ss:$8 sps:$4 sm:$0xff]  }
  0xc6   : > { %v1906_v12 = vld [vmem:[%s2453_s29 + $0x1d4] ss:$8 sps:$4 sm:$0xff]   ;;  %v1901_v13 = vld [vmem:[%s2453_s29 + $0xd0] ss:$8 sps:$4 sm:$0xff]   ;;  %v1909_v15 = vld [vmem:[%s2453_s29 + $0xc4] ss:$8 sps:$4 sm:$0xff]  }
  0xc7   : > { %v1904_v14 = vld [vmem:[%s2453_s29 + $0x1d0] ss:$8 sps:$4 sm:$0xff]   ;;  %v1912_v16 = vld [vmem:[%s2453_s29 + $0x1c4] ss:$8 sps:$4 sm:$0xff]   ;;  %v1907_v17 = vld [vmem:[%s2453_s29 + $0xc0] ss:$8 sps:$4 sm:$0xff]  }
  0xc8   : > { %663 = vmatpush1.bf16.msra.mxu0 %v1833_v28  ;;  %704 = vmatpush1.bf16.msra.mxu1 %v1834_v29  ;;  %v1910_v18 = vld [vmem:[%s2453_s29 + $0x1c0] ss:$8 sps:$4 sm:$0xff]   ;;  %v1915_v19 = vld [vmem:[%s2453_s29 + $0xb4] ss:$8 sps:$4 sm:$0xff]   ;;  %v1913_v21 = vld [vmem:[%s2453_s29 + $0xb0] ss:$8 sps:$4 sm:$0xff]  }
  0xc9   : > { %664 = vmatprep.subr.bf16.mxu0 %v1835_v30  ;;  %705 = vmatprep.subr.bf16.mxu1 %v1837_v31  ;;  %v1918_v20 = vld [vmem:[%s2453_s29 + $0x1b4] ss:$8 sps:$4 sm:$0xff]   ;;  %v1916_v22 = vld [vmem:[%s2453_s29 + $0x1b0] ss:$8 sps:$4 sm:$0xff]   ;;  %v1921_v23 = vld [vmem:[%s2453_s29 + $0xa4] ss:$8 sps:$4 sm:$0xff]  }
  0xca   : > { %v1924_v24 = vld [vmem:[%s2453_s29 + $0x1a4] ss:$8 sps:$4 sm:$0xff]   ;;  %v1919_v25 = vld [vmem:[%s2453_s29 + $0xa0] ss:$8 sps:$4 sm:$0xff]   ;;  %v1927_v27 = vld [vmem:[%s2453_s29 + $0x94] ss:$8 sps:$4 sm:$0xff]  }
  0xcb   : > { %v1922_v26 = vld [vmem:[%s2453_s29 + $0x1a0] ss:$8 sps:$4 sm:$0xff]   ;;  %v1930_v28 = vld [vmem:[%s2453_s29 + $0x194] ss:$8 sps:$4 sm:$0xff]   ;;  %v1925_v29 = vld [vmem:[%s2453_s29 + $0x90] ss:$8 sps:$4 sm:$0xff]  }
  0xcc   : > { %665 = vmatpush1.bf16.msra.mxu0 %v1839_v32  ;;  %706 = vmatpush1.bf16.msra.mxu1 %v1840_v33  ;;  %v1928_v30 = vld [vmem:[%s2453_s29 + $0x190] ss:$8 sps:$4 sm:$0xff]   ;;  %v1931_v31 = vld [vmem:[%s2453_s29 + $0x80] ss:$8 sps:$4 sm:$0xff]   ;;  %v1933_v32 = vld [vmem:[%s2453_s29 + $0x84] ss:$8 sps:$4 sm:$0xff]  }
  0xcd   : > { %1133 = vmatprep.subr.bf16.mxu0 %v1843_v34  ;;  %1174 = vmatprep.subr.bf16.mxu1 %v1846_v35  ;;  %v1934_v33 = vld [vmem:[%s2453_s29 + $0x180] ss:$8 sps:$4 sm:$0xff]   ;;  %v1936_v34 = vld [vmem:[%s2453_s29 + $0x184] ss:$8 sps:$4 sm:$0xff]   ;;  %v470_v35 = vlaneseq }
  0xcf   : > { %683 = vmatmul.mubr.bf16.vlgmr.msra.gmra.mxu0 %v435_v36  ;;  %724 = vmatmul.mubr.bf16.vlgmr.msra.gmra.mxu1 %v435_v36  ;;  %v2564_v36 = vshrl.u32 %v470_v35, 7 }
  0xd0   : > { %1134 = vmatpush1.bf16.msra.mxu0 %v1841_v37  ;;  %1175 = vmatpush1.bf16.msra.mxu1 %v1844_v38 }
  0xd1   : > { %1135 = vmatprep.subr.bf16.mxu0 %v1849_v39  ;;  %1176 = vmatprep.subr.bf16.mxu1 %v1852_v40  ;;  %v472_v37 = vsub.s32 0, %v2564_v36  ;;  %v480_v38 = vsub.s32 2, %v2564_v36  ;;  %v468_v39 = vld [vmem:[%s2447_s22] sm:$0xf]  ;;  %v476_v40 = vsub.s32 1, %v2564_v36 }
  0xd4   : > { %1136 = vmatpush1.bf16.msra.mxu0 %v1847_v41  ;;  %1177 = vmatpush1.bf16.msra.mxu1 %v1850_v42  ;;  %v484_v41 = vsub.s32 3, %v2564_v36  ;;  %v473_v42 = vrot.slane %v468_v39, %v472_v37 }
  0xd5   : > { %1137 = vmatprep.subr.bf16.mxu0 %v1855_v43  ;;  %1178 = vmatprep.subr.bf16.mxu1 %v1858_v44  ;;  %v481_v43 = vrot.slane %v468_v39, %v480_v38 }
  0xd8   : > { %1138 = vmatpush1.bf16.msra.mxu0 %v1853_v45  ;;  %1179 = vmatpush1.bf16.msra.mxu1 %v1856_v46  ;;  %v477_v46 = vrot.slane %v468_v39, %v476_v40 }
  0xd9   : > { %1139 = vmatprep.subr.bf16.mxu0 %v1861_v47  ;;  %1180 = vmatprep.subr.bf16.mxu1 %v1864_v48  ;;  %v485_v47 = vrot.slane %v468_v39, %v484_v41 }
  0xdc   : > { %1140 = vmatpush1.bf16.msra.mxu0 %v1859_v49  ;;  %1181 = vmatpush1.bf16.msra.mxu1 %v1862_v50 }
  0xdd   : > { %1141 = vmatprep.subr.bf16.mxu0 %v1867_v51  ;;  %1182 = vmatprep.subr.bf16.mxu1 %v1870_v52 }
  0xe0   : > { %1142 = vmatpush1.bf16.msra.mxu0 %v1865_v53  ;;  %1183 = vmatpush1.bf16.msra.mxu1 %v1868_v54 }
  0xe1   : > { %1143 = vmatprep.subr.bf16.mxu0 %v1873_v55  ;;  %1184 = vmatprep.subr.bf16.mxu1 %v1876_v56 }
  0xe4   : > { %1144 = vmatpush1.bf16.msra.mxu0 %v1871_v57  ;;  %1185 = vmatpush1.bf16.msra.mxu1 %v1874_v58 }
  0xe5   : > { %1145 = vmatprep.subr.bf16.mxu0 %v1879_v59  ;;  %1186 = vmatprep.subr.bf16.mxu1 %v1882_v60 }
  0xe8   : > { %1146 = vmatpush1.bf16.msra.mxu0 %v1877_v61  ;;  %1187 = vmatpush1.bf16.msra.mxu1 %v1880_v62 }
  0xe9   : > { %1147 = vmatprep.subr.bf16.mxu0 %v1885_v63  ;;  %1188 = vmatprep.subr.bf16.mxu1 %v1888_v0 }
  0xec   : > { %1148 = vmatpush1.bf16.msra.mxu0 %v1883_v1  ;;  %1189 = vmatpush1.bf16.msra.mxu1 %v1886_v2 }
  0xed   : > { %1149 = vmatprep.subr.bf16.mxu0 %v1891_v3  ;;  %1190 = vmatprep.subr.bf16.mxu1 %v1894_v4 }
  0xf0   : > { %1150 = vmatpush2.bf16.msra.mxu0 %v1889_v5  ;;  %1191 = vmatpush2.bf16.msra.mxu1 %v1892_v6  ;;  %v2192_v6 = vmov 1983009808  }
  0xf1   : > { %1151 = vmatprep.subr.bf16.mxu0 %v1897_v7  ;;  %1192 = vmatprep.subr.bf16.mxu1 %v1900_v8  ;;  %v1219_v7 = vunpack.c.l.s4 %v2192_v6 }
  0xf4   : > { %1152 = vmatpush2.bf16.msra.mxu0 %v1895_v9  ;;  %1193 = vmatpush2.bf16.msra.mxu1 %v1898_v10  ;;  %v1220_v9 = vunpack.c.0.s8 %v1219_v7 }
  0xf5   : > { %1153 = vmatprep.subr.bf16.mxu0 %v1903_v11  ;;  %1194 = vmatprep.subr.bf16.mxu1 %v1906_v12 }
  0xf8   : > { %1154 = vmatpush2.bf16.msra.mxu0 %v1901_v13  ;;  %1195 = vmatpush2.bf16.msra.mxu1 %v1904_v14 }
  0xf9   : > { %1155 = vmatprep.subr.bf16.mxu0 %v1909_v15  ;;  %1196 = vmatprep.subr.bf16.mxu1 %v1912_v16  ;;  %v2576_v15 = vsub.s32 %v1220_v9, %v2564_v36 }
  0xfc   : > { %1156 = vmatpush2.bf16.msra.mxu0 %v1907_v17  ;;  %1197 = vmatpush2.bf16.msra.mxu1 %v1910_v18 }
  0xfd   : > { %1157 = vmatprep.subr.bf16.mxu0 %v1915_v19  ;;  %1198 = vmatprep.subr.bf16.mxu1 %v1918_v20  ;;  %v744_v20 = vld [vmem:[#allocation2] sm:$0xf] }
 0x100   : > { %1158 = vmatpush2.bf16.msra.mxu0 %v1913_v21  ;;  %1199 = vmatpush2.bf16.msra.mxu1 %v1916_v22 }
 0x101   : > { %1159 = vmatprep.subr.bf16.mxu0 %v1921_v23  ;;  %1200 = vmatprep.subr.bf16.mxu1 %v1924_v24 }
 0x104   : > { %1160 = vmatpush2.bf16.msra.mxu0 %v1919_v25  ;;  %1201 = vmatpush2.bf16.msra.mxu1 %v1922_v26 }
 0x105   : > { %1161 = vmatprep.subr.bf16.mxu0 %v1927_v27  ;;  %1202 = vmatprep.subr.bf16.mxu1 %v1930_v28 }
 0x108   : > { %1162 = vmatpush2.bf16.msra.mxu0 %v1925_v29  ;;  %1203 = vmatpush2.bf16.msra.mxu1 %v1928_v30 }
 0x109   : > { %1163 = vmatprep.subr.bf16.mxu0 %v1933_v32  ;;  %1204 = vmatprep.subr.bf16.mxu1 %v1936_v34 }
 0x10c   : > { %1164 = vmatpush2.bf16.msra.mxu0 %v1931_v31  ;;  %1205 = vmatpush2.bf16.msra.mxu1 %v1934_v33 }
 0x18f   : > { %v684_v44 = vpop.f32.mrf.mxu0  ;;  %v725_v45 = vpop.f32.mrf.mxu1 }
 0x190   : > { %v685_v48 = vadd.f32 %v684_v44, %v473_v42  ;;  %v726_v49 = vadd.f32 %v725_v45, %v481_v43 }
 0x191   : > { %v686_v50 = vpop.f32.mrf.mxu0  ;;  %v727_v51 = vpop.f32.mrf.mxu1 }
 0x192   : > { %v736_v52 = vmul.f32 0.01, %v685_v48  ;;  %vm732_vm0 = vcmp.ge.f32.partialorder %v685_v48, 0.0  ;;  %v738_v53 = vmul.f32 0.01, %v726_v49  ;;  %v687_v54 = vadd.f32 %v686_v50, %v477_v46 }
 0x193   : > { %v728_v55 = vadd.f32 %v727_v51, %v485_v47  ;;  %v688_v56 = vpop.f32.mrf.mxu0  ;;  %v729_v57 = vpop.f32.mrf.mxu1  ;;  %vm734_vm1 = vcmp.ge.f32.partialorder %v726_v49, 0.0 }
 0x194   : > { %vm733_vm2 = vcmp.ge.f32.partialorder %v687_v54, 0.0  ;;  %v737_v58 = vmul.f32 0.01, %v687_v54  ;;  %v740_v61 = vsel %vm732_vm0, %v685_v48, %v736_v52  ;;  %v742_v63 = vsel %vm734_vm1, %v726_v49, %v738_v53 }
 0x195   : > { %v689_v59 = vpop.f32.mrf.mxu0  ;;  %v730_v60 = vpop.f32.mrf.mxu1  ;;  %vm735_vm3 = vcmp.ge.f32.partialorder %v728_v55, 0.0  ;;  %v739_v62 = vmul.f32 0.01, %v728_v55  ;;  %v745_v3 = vpack.c.bf16 %v740_v61, %v740_v61  ;;  %v747_v5 = vpack.c.bf16 %v742_v63, %v742_v63 }
 0x196   : > { %v741_v0 = vsel %vm733_vm2, %v687_v54, %v737_v58 }
 0x197   : > { %v746_v1 = vpack.c.bf16 %v741_v0, %v741_v0  ;;  %v743_v2 = vsel %vm735_vm3, %v728_v55, %v739_v62 }
 0x198   : > { %v748_v4 = vpack.c.bf16 %v743_v2, %v743_v2 }
 0x199   : > { %1165 = vmatprep.mubr.bf16.mxu0 %v746_v1 }
 0x19a   : > { %1206 = vmatprep.mubr.bf16.mxu1 %v748_v4  ;;  %1166 = vmatmul.mubr.bf16.vlgmr.msra.gmra.mxu0 %v745_v3 }
 0x19b   : > { %1207 = vmatmul.mubr.bf16.vlgmr.msra.gmra.mxu1 %v747_v5 }
 0x25a   : > { %v1167_v8 = vpop.f32.mrf.mxu0 }
 0x25b   : > { %v1208_v10 = vpop.f32.mrf.mxu1 }
 0x25c   : > { %v1169_v11 = vpop.f32.mrf.mxu0  ;;  %v1209_v13 = vadd.f32 %v1208_v10, %v1167_v8 }
 0x25d   : > { %v1210_v12 = vpop.f32.mrf.mxu1 }
 0x25e   : > { %v1211_v14 = vadd.f32 %v1210_v12, %v1169_v11  ;;  %v1171_v16 = vpop.f32.mrf.mxu0 }
 0x25f   : > { %v1212_v17 = vpop.f32.mrf.mxu1 }
 0x260   : > { %v1217_v18 = vcombine.low %v1209_v13, %v1211_v14  ;;  %v1172_v19 = vpop.f32.mrf.mxu0 }
 0x261   : > { %v1213_v21 = vpop.f32.mrf.mxu1 }
 0x262   : > { %v1224_v22 = vrot.slane %v1217_v18, %v2576_v15  ;;  %1231 = sbr.rel (%p1653_p7) target bundleno = 908 (0x38c), region = 80 }
 0x264   : > { %v1226_v23 = vadd.f32 %v1224_v22, %v744_v20 }
 0x266   : > { %1227 = vst [vmem:[#allocation2] sm:$0xf] %v1226_v23 }
 0x267   : > { %v1288_v24 = vld [vmem:[#allocation11 + $0xf8] sm:$0xff]  ;;  %v1287_v26 = vld [vmem:[#allocation11 + $0xf0] sm:$0xff]  ;;  %v1286_v28 = vld [vmem:[#allocation11 + $0xe8] sm:$0xff]  ;;  %vm1377_vm5 = vcmask 1041408  }
 0x268   : > { %v1272_v25 = vld [vmem:[#allocation11 + $0x78] sm:$0xff]  ;;  %1663 = vmatprep.subr.mxu0 %v1288_v24  ;;  %v1271_v27 = vld [vmem:[#allocation11 + $0x70] sm:$0xff]  ;;  %v1270_v29 = vld [vmem:[#allocation11 + $0x68] sm:$0xff] }
 0x269   : > { %1664 = vmatpush3.msra.mxu0 %v1272_v25  ;;  %v1285_v30 = vld [vmem:[#allocation11 + $0xe0] sm:$0xff]  ;;  %v1284_v32 = vld [vmem:[#allocation11 + $0xd8] sm:$0xff]  ;;  %v1283_v34 = vld [vmem:[#allocation11 + $0xd0] sm:$0xff] }
 0x26a   : > { %1665 = vmatprep.subr.mxu0 %v1287_v26  ;;  %v1269_v31 = vld [vmem:[#allocation11 + $0x60] sm:$0xff]  ;;  %v1268_v33 = vld [vmem:[#allocation11 + $0x58] sm:$0xff]  ;;  %v1267_v35 = vld [vmem:[#allocation11 + $0x50] sm:$0xff] }
 0x26b   : > { %1666 = vmatpush3.msra.mxu0 %v1271_v27  ;;  %v1282_v38 = vld [vmem:[#allocation11 + $0xc8] sm:$0xff]  ;;  %v1233_v41 = vld [vmem:[#allocation9] sm:$0x3]  ;;  %v1281_v42 = vld [vmem:[#allocation11 + $0xc0] sm:$0xff] }
 0x26c   : > { %1667 = vmatprep.subr.mxu0 %v1286_v28  ;;  %v1266_v39 = vld [vmem:[#allocation11 + $0x48] sm:$0xff]  ;;  %v1238_v43 = vrot.slane %v1233_v41, %v472_v37  ;;  %v1242_v44 = vrot.slane %v1233_v41, %v476_v40  ;;  %v1265_v45 = vld [vmem:[#allocation11 + $0x40] sm:$0xff]  ;;  %v1280_v46 = vld [vmem:[#allocation11 + $0xb8] sm:$0xff] }
 0x26d   : > { %1668 = vmatpush3.msra.mxu0 %v1270_v29  ;;  %v1264_v48 = vld [vmem:[#allocation11 + $0x38] sm:$0xff]  ;;  %v1232_v49 = vld [vmem:[#allocation2] sm:$0xf]  ;;  %v1278_v53 = vld [vmem:[#allocation11 + $0xa8] sm:$0xff] }
 0x26e   : > { %1669 = vmatprep.subr.mxu0 %v1285_v30  ;;  %v1243_v47 = vcombine.low %v1238_v43, %v1242_v44  ;;  %v1279_v50 = vld [vmem:[#allocation11 + $0xb0] sm:$0xff]  ;;  %v1262_v36 = vld [vmem:[#allocation11 + $0x28] sm:$0xff]  ;;  %v1277_v40 = vld [vmem:[#allocation11 + $0xa0] sm:$0xff] }
 0x26f   : > { %1670 = vmatpush3.msra.mxu0 %v1269_v31  ;;  %v1263_v52 = vld [vmem:[#allocation11 + $0x30] sm:$0xff]  ;;  %v1261_v55 = vld [vmem:[#allocation11 + $0x20] sm:$0xff]  ;;  %v1276_v56 = vld [vmem:[#allocation11 + $0x98] sm:$0xff] }
 0x270   : > { %1671 = vmatprep.subr.mxu0 %v1284_v32  ;;  %v1250_v51 = vrot.slane %v1243_v47, %v2576_v15  ;;  %v1260_v58 = vld [vmem:[#allocation11 + $0x18] sm:$0xff]  ;;  %v1275_v60 = vld [vmem:[#allocation11 + $0x90] sm:$0xff]  ;;  %v1274_v63 = vld [vmem:[#allocation11 + $0x88] sm:$0xff] }
 0x271   : > { %1672 = vmatpush3.msra.mxu0 %v1268_v33  ;;  %v1259_v61 = vld [vmem:[#allocation11 + $0x10] sm:$0xff]  ;;  %v1258_v0 = vld [vmem:[#allocation11 + $0x8] sm:$0xff]  ;;  %v1273_v1 = vld [vmem:[#allocation11 + $0x80] sm:$0xff] }
 0x272   : > { %1673 = vmatprep.subr.mxu0 %v1283_v34  ;;  %v1252_v37 = vadd.f32 %v1250_v51, %v1232_v49  ;;  %v1257_v2 = vld [vmem:[#allocation11] sm:$0xff] }
 0x273   : > { %1674 = vmatpush3.msra.mxu0 %v1267_v35  ;;  %v1654_v4 = vld [vmem:[#allocation12] ss:$0 sm:$0xff] }
 0x274   : > { %1675 = vmatprep.subr.mxu0 %v1282_v38  ;;  %vm1253_vm4 = vcmp.ge.f32.partialorder %v1252_v37, 0.0  ;;  %v1254_v54 = vmul.f32 0.01, %v1252_v37 }
 0x275   : > { %1676 = vmatpush3.msra.mxu0 %v1266_v39 }
 0x276   : > { %1677 = vmatprep.subr.mxu0 %v1281_v42  ;;  %v1255_v57 = vsel %vm1253_vm4, %v1252_v37, %v1254_v54 }
 0x277   : > { %1678 = vmatpush3.msra.mxu0 %v1265_v45  ;;  %1256 = vst [vmem:[%s2621_s7] sm:$0xf] %v1255_v57  ;;  %v1303_v59 = vrot.slane %v1255_v57, %v2576_v15 }
 0x278   : > { %1679 = vmatprep.subr.mxu0 %v1280_v46 }
 0x279   : > { %1680 = vmatpush3.msra.mxu0 %v1264_v48  ;;  %v1304_v62 = vcombine.high %v1303_v59, %v1303_v59 }
 0x27a   : > { %1681 = vmatprep.subr.mxu0 %v1279_v50 }
 0x27b   : > { %1682 = vmatpush3.msra.mxu0 %v1263_v52  ;;  %1371 = vmatprep.mubr.f32.mxu0 %v1304_v62 }
 0x27c   : > { %1683 = vmatprep.subr.mxu0 %v1278_v53 }
 0x27d   : > { %1684 = vmatpush3.msra.mxu0 %v1262_v36 }
 0x27e   : > { %1685 = vmatprep.subr.mxu0 %v1277_v40 }
 0x27f   : > { %1686 = vmatpush3.msra.mxu0 %v1261_v55 }
 0x280   : > { %1687 = vmatprep.subr.mxu0 %v1276_v56 }
 0x281   : > { %1688 = vmatpush3.msra.mxu0 %v1260_v58 }
 0x282   : > { %1689 = vmatprep.subr.mxu0 %v1275_v60 }
 0x283   : > { %1690 = vmatpush3.msra.mxu0 %v1259_v61 }
 0x284   : > { %1691 = vmatprep.subr.mxu0 %v1274_v63 }
 0x285   : > { %1692 = vmatpush3.msra.mxu0 %v1258_v0 }
 0x286   : > { %1693 = vmatprep.subr.mxu0 %v1273_v1 }
 0x287   : > { %1694 = vmatpush3.msra.mxu0 %v1257_v2 }
 0x288   : > { %1372 = vmatmul.mubr.f32.vlgmr.msra.gmra.mxu0 %v1303_v59 }
 0x348   : > { %v1695_v3 = vpop.f32.mrf.mxu0 }
 0x34a   : > { %v1696_v5 = vpop.f32.mrf.mxu0 }
 0x34b   : > { %v1697_v6 = vadd.f32 %v1696_v5, %v1695_v3 }
 0x34d   : > { %v1374_v7 = vadd.f32 %v1697_v6, %v1654_v4 }
 0x34f   : > { %v1378_v8 = vsel %vm1377_vm5, %v1374_v7, -inf }
 0x350   : > { %v1379_v9 = vrot.slane %v1378_v8, 4 }
 0x352   : > { %v1380_v10 = vmax.f32 %v1378_v8, %v1379_v9 }
 0x354   : > { %v1381_v11 = vrot.slane %v1380_v10, 2 }
 0x356   : > { %v1382_v12 = vmax.f32 %v1380_v10, %v1381_v11 }
 0x358   : > { %v1383_v13 = vrot.slane %v1382_v12, 1 }
 0x35a   : > { %v1384_v14 = vmax.f32 %v1382_v12, %v1383_v13 }
 0x35c   : > { %v1385_v15 = vsub.f32 %v1374_v7, %v1384_v14 }
 0x35e   : > { %v1386_v16 = vmul.f32 1.442695, %v1385_v15 }
 0x360   : > { %1937 = vpow2.f32 %v1386_v16 }
 0x36d   : > { %v1938_v17 = vpop.eup %1937 }
 0x36e   : > { %v1388_v18 = vsel %vm1377_vm5, %v1938_v17, 0.0 }
 0x36f   : > { %v1389_v19 = vrot.slane %v1388_v18, 4 }
 0x371   : > { %v1390_v20 = vadd.f32 %v1389_v19, %v1388_v18 }
 0x373   : > { %v1391_v21 = vrot.slane %v1390_v20, 2 }
 0x375   : > { %v1392_v22 = vadd.f32 %v1391_v21, %v1390_v20 }
 0x377   : > { %v1393_v23 = vrot.slane %v1392_v22, 1 }
 0x379   : > { %v1394_v24 = vadd.f32 %v1393_v23, %v1392_v22 }
 0x37b   : > { %1939 = vrcp.f32 %v1394_v24 }
 0x388   : > { %v1940_v25 = vpop.eup %1939 }
 0x389   : > { %v1396_v26 = vmul.f32 %v1940_v25, %v1938_v17 }
 0x38b   : > { %1397 = vst [vmem:[#allocation14] sm:$0x3] %v1396_v26 }
 0x38c PF: > { %p1747_p12 = scmp.eq.s32.totalorder %s2258_s9, 7  ;;  %s2193_s23 = smov [#allocation14]  }
 0x38d   : > { %s1408_s17 = sshll.u32 %s2193_s23, 4  ;;  %s1409_s17 = int_to_ptr.vmem [resolvable:$true] %s1408_s17 }
 0x38e   : > { %s2103_s15 = scalar_lea.vmem %s1409_s17, 32  ;;  %p2110_p11 = scmp.lt.s32.totalorder %s1409_s17, %s1409_s17 }
 0x38f   : > { %p2104_p4 = scmp.ne.s32.totalorder %s1409_s17, %s2103_s15  ;;  %p2111_p5 = scmp.lt.s32.totalorder %s2103_s15, %s2103_s15 }
 0x391   : > { %p2105_p13 = pnand %p2104_p4, %p1747_p12  ;;  %p2112_p10 = por %p2111_p5, %p2110_p11 }
 0x393   : > { %p2106_p9 = pneg %p2105_p13 }
 0x395   : > { %p2113_p6 = pnand %p2112_p10, %p2106_p9 }
 0x397   : > { %2116 = shalt.err (!%p2113_p6)
}
 0x398   : > { %1717 = dma.vmem_to_hbm [thread:$0]  (%p1747_p12), %s1409_s17, 32, %s2622_s8, [#allocation5]  }
 0x399   : > { %2160 = dma.done.wait (%p1747_p12), [#allocation5], 32  }
 0x39a   : > { %2162 = vsyncadd (%p1747_p12), [#allocation5], 4294967264 }
 0x39b PF: > { %s2660_s25 = sld [smem:[#allocation20_spill]]  ;;  %p25_p0 = scmp.ge.s32.totalorder %s2278_s14, 10  }
 0x39c   : > { %s2661_s29 = sld [smem:[#allocation21_spill]]  ;;  %s2662_s27 = smov %s2169_s28 }
 0x39d   : > { %s2664_s30 = smov %s2278_s14  ;;  %27 = sbr.rel (!%p25_p0) target bundleno = 12 (0xc), region = 137 }
 0x3a1   : > { %s2663_s28 = smov %s2660_s25 }
 0x3a2   :  { %1424 = vsyncpa [#allocation4], 1 }
 0x3a3   :  { %1426 = vsyncpa [#allocation4 + $0x1], 1 }
 0x3a4   :  { %1427 = vsyncpa [#allocation7], 1 }
 0x3a5   :  { %1429 = vsyncpa [#allocation7 + $0x1], 1 }
 0x3a6   :  { %1430 = vsyncpa [#allocation10], 1 }
 0x3a7   :  { %1431 = vsyncpa [#allocation13], 1 }
 0x3a8   :  { %1432 = vsyncpa [#allocation5], 1 }
 0x3a9   :  { %1434 = vsyncpa [#allocation5 + $0x1], 1 }

</bundles_post_ra>
